<compile_context>
chip_gen: v6e
topology: v6e:2x2x1
jax: 0.10.0
libtpu: 0.0.40
codegen_flags: <defaults>
</compile_context>

<pallas_src>
import math
from functools import partial

import jax
import jax.numpy as jnp
from jax.experimental import pallas as pl
from jax.experimental.pallas import tpu as pltpu

D_MODEL = 32
MAX_LEN = 512
_SEQ_TILE = 8  # sublane-aligned row tile


# ------------------------- buffer construction (== __init__) -------------------------

def make_positional_embedding_table(d_model: int, max_len: int = 512) -> jnp.ndarray:
    """Builds the sinusoidal table exactly like PositionalEmbedding.__init__ (setup, not forward)."""
    position = jnp.arange(max_len, dtype=jnp.float32)[:, None]                    # (L, 1)
    div_term = jnp.exp(jnp.arange(0, d_model, 2, dtype=jnp.float32)
                       * (-(math.log(10000.0) / d_model)))                        # (d_model/2,)
    angles = position * div_term                                                  # (L, d_model/2)
    pe = jnp.zeros((max_len, d_model), jnp.float32)
    pe = pe.at[:, 0::2].set(jnp.sin(angles))
    pe = pe.at[:, 1::2].set(jnp.cos(angles))
    return pe


# ------------------------------------ kernel -----------------------------------------

def _pe_slice_kernel(pe_ref, o_ref):
    # forward(): return pe[:, :x.size(1)] -- a windowed copy of the registered buffer.
    o_ref[...] = pe_ref[...]


# ------------------------------------ forward ----------------------------------------

@partial(jax.jit, static_argnames=("seq_len",))
def _pe_forward(pe, *, seq_len):
    max_len, d_model = pe.shape
    assert seq_len <= max_len, "sequence longer than max_len"
    seq_pad = max(_SEQ_TILE, ((seq_len + _SEQ_TILE - 1) // _SEQ_TILE) * _SEQ_TILE)
    assert seq_pad <= max_len

    out = pl.pallas_call(
        _pe_slice_kernel,
        out_shape=jax.ShapeDtypeStruct((seq_pad, d_model), pe.dtype),
        grid=(seq_pad // _SEQ_TILE,),
        in_specs=[pl.BlockSpec((_SEQ_TILE, d_model), lambda i: (i, 0))],   # only rows [0, seq_pad)
        out_specs=pl.BlockSpec((_SEQ_TILE, d_model), lambda i: (i, 0)),
        compiler_params=pltpu.CompilerParams(dimension_semantics=("parallel",)),
    )(pe)

    # Match the PyTorch return shape (1, seq_len, d_model) == self.pe[:, :x.size(1)].
    return out[:seq_len][None]


def positional_embedding_forward(x, pe):
    # The reference forward only reads x.size(1); x's contents are untouched, so we
    # never DMA the token tensor at all.
    return _pe_forward(pe, seq_len=x.shape[1])


# ------------------------------------- main -------------------------------------------

if __name__ == "__main__":
    key = jax.random.PRNGKey(0)

    B, seq_len = 2, 8
    # Token-id sequence; only its sequence length (dim 1) matters to the forward.
    x = jax.random.randint(key, (B, seq_len), 0, 100, dtype=jnp.int32)

    pe = make_positional_embedding_table(D_MODEL, MAX_LEN)     # registered buffer

    out = positional_embedding_forward(x, pe)
    out = jax.block_until_ready(out)

    assert out.shape == (1, seq_len, D_MODEL)
    # Cross-check against the reference forward (a direct slice of the buffer).
    ref = pe[None, :seq_len, :]
    assert bool(jnp.allclose(out, ref))
    assert bool(jnp.isfinite(out).all())
    print("KERNEL_OK")
</pallas_src>

<mosaic_0001>
module attributes {stable_mosaic.version = 11 : i64} {
  func.func @_pe_slice_kernel(%arg0: i32, %arg1: memref<8x32xf32, #tpu.memory_space<vmem>>, %arg2: memref<8x32xf32, #tpu.memory_space<vmem>>) attributes {dimension_semantics = [#tpu.dimension_semantics<parallel>], iteration_bounds = array<i64: 1>, scalar_prefetch = 0 : i64, scratch_operands = 0 : i64, tpu.core_type = #tpu.core_type<tc>, window_params = [{transform_indices = @transform_0, window_bounds = array<i64: 8, 32>}, {transform_indices = @transform_1, window_bounds = array<i64: 8, 32>}]} {
    %c0 = arith.constant 0 : index
    %c0_0 = arith.constant 0 : index
    %0 = vector.load %arg1[%c0, %c0_0] : memref<8x32xf32, #tpu.memory_space<vmem>>, vector<8x32xf32>
    %c0_1 = arith.constant 0 : index
    %c0_2 = arith.constant 0 : index
    %1 = vector.load %arg2[%c0_1, %c0_2] : memref<8x32xf32, #tpu.memory_space<vmem>>, vector<8x32xf32>
    tpu.vector_store %arg2[%c0_1, %c0_2], %0 {strides = array<i32>} : memref<8x32xf32, #tpu.memory_space<vmem>>, vector<8x32xf32>,
    return
  }
  func.func @transform_0(%arg0: i32) -> (i32, i32) {
    %c0_i32 = arith.constant 0 : i32
    %c0_i32_0 = arith.constant 0 : i32
    return %arg0, %c0_i32 : i32, i32
  }
  func.func @transform_1(%arg0: i32) -> (i32, i32) {
    %c0_i32 = arith.constant 0 : i32
    %c0_i32_0 = arith.constant 0 : i32
    return %arg0, %c0_i32 : i32, i32
  }
}

</mosaic_0001>

<bundles_post_ra>
// kernel: _pe_forward.1
= control target key start
LH: loop header
LB: loop body
LE: loop exit
PB: predicated region body
PF: predicated region fallthrough
CT: control target
= control target key end

     0   :  { %vm10_vm0 = vcmask 261120   ;;  %s66_s0 = inlined_call_operand.vmem [shape: f32[512,32], index: 0, kind: input, shape index: {}]   ;;  %s67_s1 = inlined_call_operand.hbm [shape: f32[8,32], index: 1, kind: output, shape index: {}]  }
   0x1   :  { %v9_v0 = vld [vmem:[%s66_s0] sm:$0xff] }
   0x2   :  { %6 = vsyncpa [#allocation3], 0  ;;  %11 = vst.msk [vmem:[#allocation2] sm:$0xff] %vm10_vm0, %v9_v0  ;;  %s49_s8 = smov [#allocation2]  }
   0x3   :  { %s18_s9 = sshll.u32 %s49_s8, 4  ;;  %s19_s9 = int_to_ptr.vmem [resolvable:$true] %s18_s9 }
   0x4   :  { %s27_s10 = scalar_lea.vmem %s19_s9, 128  ;;  %p32_p1 = scmp.lt.s32.totalorder %s19_s9, %s19_s9 }
   0x5   :  { %p28_p0 = scmp.ne.s32.totalorder %s19_s9, %s27_s10  ;;  %p33_p2 = scmp.lt.s32.totalorder %s27_s10, %s27_s10 }
   0x7   :  { %p34_p3 = por %p33_p2, %p32_p1 }
   0x9   :  { %p35_p4 = pnand %p34_p3, %p28_p0 }
   0xb   :  { %38 = shalt.err (!%p35_p4)
}
   0xc   :  { %21 = dma.vmem_to_hbm [thread:$0]  %s19_s9, 128, %s67_s1, [#allocation3]  }
   0xd   :  { %47 = dma.done.wait [#allocation3], 128  }
   0xe   :  { %48 = vsyncadd [#allocation3], 4294967168 }
   0xf   :  { %25 = vsyncpa [#allocation3], 1 }

</bundles_post_ra>
